<compile_context>
chip_gen: v5e
topology: v5e:2x2
jax: 0.10.0
libtpu: 0.0.40
codegen_flags: <defaults>
</compile_context>

<pallas_src>
import functools

import jax
import jax.numpy as jnp
from jax.experimental import pallas as pl
from jax.experimental.pallas import tpu as pltpu


def _rnn_seq_kernel(xproj_ref, h0_ref, wh_ref, out_ref, state_ref, *, hidden_size):
    """One timestep of the recurrence for one 8-row batch block.

    xproj_ref : (8, n_pad)  x_t @ W_x + b   (pad logit cols already at -1e30)
    h0_ref    : (8, n_pad)  initial hidden in cols [0:H], zeros elsewhere
    wh_ref    : (n_pad, n_pad)  W_h in rows [0:H], zero rows elsewhere
    out_ref   : (8, n_pad)  per-step slab  [hidden | softmax probs | 0]
    state_ref : (8, n_pad)  VMEM scratch carrying the previous step's slab
    """
    t = pl.program_id(1)

    @pl.when(t == 0)
    def _():
        state_ref[...] = h0_ref[...]

    # z = x_t @ W_x + b + h_{t-1} @ W_h   (only the recurrent dot runs per step)
    z = xproj_ref[...] + jnp.dot(
        state_ref[...], wh_ref[...], preferred_element_type=jnp.float32
    )

    B, N = z.shape
    col = jax.lax.broadcasted_iota(jnp.int32, (B, N), 1)
    is_logit = col >= hidden_size  # i2o columns (incl. pads, which sit at -1e30)

    # Softmax over the logit columns only (pad columns -> exp == 0).
    logits = jnp.where(is_logit, z, jnp.float32(-1e30))
    m = jnp.max(logits, axis=1, keepdims=True)
    e = jnp.exp(logits - m)
    denom = jnp.sum(e, axis=1, keepdims=True)
    probs = e * pl.reciprocal(denom, approx=True)

    # Lane-dense slab: hidden | probs | 0.  Pad/prob columns hit zero rows of W_h,
    # so this slab can directly serve as the next step's recurrent state.
    slab = jnp.where(is_logit, probs, z)
    out_ref[...] = slab.astype(out_ref.dtype)
    state_ref[...] = slab


def prepack_params(w_i2h, b_i2h, w_i2o, b_i2o, input_size):
    """One-time packing of the two Linear layers (hoisted out of the hot path).

    w_i2h: (I+H, H), b_i2h: (H,), w_i2o: (I+H, O), b_i2o: (O,)
    (weights pre-transposed relative to nn.Linear.weight: (fan_in, fan_out) layout)
    """
    I = input_size
    H = w_i2h.shape[1]
    O = w_i2o.shape[1]
    n_real = H + O
    n_pad = 128 * pl.cdiv(n_real, 128)
    pad = n_pad - n_real

    w_cat = jnp.concatenate([w_i2h, w_i2o], axis=1)          # (I+H, H+O)
    w_cat = jnp.pad(w_cat, ((0, 0), (0, pad)))               # zero pad columns
    b_cat = jnp.concatenate([b_i2h, b_i2o], axis=0)          # (H+O,)
    b_cat = jnp.pad(b_cat, (0, pad), constant_values=-1e30)  # pads -> -inf-ish logits

    w_x = w_cat[:I]                                          # (I, n_pad)
    w_h = w_cat[I:]                                          # (H, n_pad)
    # Row-pad W_h to the full slab width with zeros so the recurrent state can be
    # the previous output slab (prob / pad columns multiply zero rows -> no effect).
    w_h_pad = jnp.pad(w_h, ((0, n_pad - H), (0, 0)))         # (n_pad, n_pad)
    b2 = b_cat.reshape(1, n_pad)

    return {"w_x": w_x, "w_h": w_h_pad, "b": b2,
            "I": I, "H": H, "O": O, "n_pad": n_pad}


def rnn_sequence(xs, h0, params):
    """Run the RNN cell over a sequence with ONE fused Pallas kernel.

    xs: (T, B, I) float32,  h0: (B, H) float32
    returns (outputs (T, B, O) softmaxed, hiddens (T, B, H))
    """
    T, B, I = xs.shape
    H, O, n_pad = params["H"], params["O"], params["n_pad"]

    B_pad = 8 * pl.cdiv(B, 8)            # f32 sublane tile -> unmasked full-vreg access
    nb = B_pad // 8

    # Hoisted input projection: one large, well-shaped GEMM over all timesteps.
    xs_p = jnp.pad(xs, ((0, 0), (0, B_pad - B), (0, 0)))
    x_proj = (xs_p.reshape(T * B_pad, I) @ params["w_x"] + params["b"])
    x_proj = x_proj.reshape(T, B_pad, n_pad)

    # Initial state slab: h0 in cols [0:H], zeros elsewhere.
    h0_pad = jnp.zeros((B_pad, n_pad), jnp.float32).at[:B, :H].set(h0)

    w_h = params["w_h"]                  # (n_pad, n_pad), VMEM-resident across the grid

    cost = pl.CostEstimate(
        flops=2 * T * B_pad * n_pad * n_pad + 6 * T * B_pad * n_pad,
        transcendentals=T * B_pad * n_pad,
        bytes_accessed=4 * (x_proj.size + T * B_pad * n_pad + w_h.size + h0_pad.size),
    )

    slab = pl.pallas_call(
        functools.partial(_rnn_seq_kernel, hidden_size=H),
        out_shape=jax.ShapeDtypeStruct((T, B_pad, n_pad), jnp.float32),
        grid=(nb, T),
        in_specs=[
            pl.BlockSpec((None, 8, n_pad), lambda b, t: (t, b, 0)),   # x_proj[t], per step
            pl.BlockSpec((8, n_pad), lambda b, t: (b, 0)),            # h0, DMA'd once
            pl.BlockSpec((n_pad, n_pad), lambda b, t: (0, 0)),        # W_h, DMA'd once
        ],
        out_specs=pl.BlockSpec((None, 8, n_pad), lambda b, t: (t, b, 0)),
        scratch_shapes=[pltpu.VMEM((8, n_pad), jnp.float32)],         # carried state
        compiler_params=pltpu.CompilerParams(
            dimension_semantics=("parallel", "arbitrary"),            # batch || , time seq
        ),
        cost_estimate=cost,
    )(x_proj, h0_pad, w_h)

    hiddens = slab[:, :B, :H]
    outputs = slab[:, :B, H:H + O]
    return outputs, hiddens


def rnn_cell(inp, hidden, params):
    """Single-step forward, exactly matching the PyTorch module's forward():
    returns (softmax(i2o([x|h])), i2h([x|h]))."""
    outputs, hiddens = rnn_sequence(inp[None], hidden, params)
    return outputs[0], hiddens[0]


def init_params(key, input_size, hidden_size, output_size):
    """Deterministic init mimicking nn.Linear default (uniform +/- 1/sqrt(fan_in))."""
    fan_in = input_size + hidden_size
    bound = 1.0 / jnp.sqrt(fan_in)
    k1, k2, k3, k4 = jax.random.split(key, 4)
    w_i2h = jax.random.uniform(k1, (fan_in, hidden_size), jnp.float32, -bound, bound)
    b_i2h = jax.random.uniform(k2, (hidden_size,), jnp.float32, -bound, bound)
    w_i2o = jax.random.uniform(k3, (fan_in, output_size), jnp.float32, -bound, bound)
    b_i2o = jax.random.uniform(k4, (output_size,), jnp.float32, -bound, bound)
    return w_i2h, b_i2h, w_i2o, b_i2o


if __name__ == "__main__":
    input_size, hidden_size, output_size = 16, 32, 8
    batch, seq = 2, 8

    key = jax.random.PRNGKey(0)
    kx, kp = jax.random.split(key)

    xs = jax.random.normal(kx, (seq, batch, input_size), jnp.float32)
    h0 = jnp.zeros((batch, hidden_size), jnp.float32)          # init_hidden()

    w_i2h, b_i2h, w_i2o, b_i2o = init_params(kp, input_size, hidden_size, output_size)
    params = prepack_params(w_i2h, b_i2h, w_i2o, b_i2o, input_size)

    # Single-step forward (the original module's semantics).
    out0, h1 = rnn_cell(xs[0], h0, params)
    # Sequence-fused path (T steps inside one pallas_call).
    outs, hids = rnn_sequence(xs, h0, params)
    jax.block_until_ready((out0, h1, outs, hids))

    # ---- plain-JAX reference --------------------------------------------------
    def ref_step(x, h):
        comb = jnp.concatenate([x, h], axis=1)
        nh = comb @ w_i2h + b_i2h
        o = jax.nn.softmax(comb @ w_i2o + b_i2o, axis=1)
        return o, nh

    ro0, rh1 = ref_step(xs[0], h0)
    assert out0.shape == (batch, output_size) and h1.shape == (batch, hidden_size)
    assert jnp.allclose(h1, rh1, atol=1e-3, rtol=1e-3), "single-step hidden mismatch"
    assert jnp.allclose(out0, ro0, atol=2e-3, rtol=2e-3), "single-step output mismatch"

    h = h0
    ref_outs, ref_hids = [], []
    for t in range(seq):
        o, h = ref_step(xs[t], h)
        ref_outs.append(o)
        ref_hids.append(h)
    ref_outs = jnp.stack(ref_outs)
    ref_hids = jnp.stack(ref_hids)

    assert outs.shape == (seq, batch, output_size)
    assert hids.shape == (seq, batch, hidden_size)
    assert jnp.allclose(hids, ref_hids, atol=1e-3, rtol=1e-3), "sequence hidden mismatch"
    assert jnp.allclose(outs, ref_outs, atol=2e-3, rtol=2e-3), "sequence output mismatch"

    print("KERNEL_OK")
</pallas_src>

<mosaic_0001>
module attributes {stable_mosaic.version = 11 : i64} {
  func.func @_rnn_seq_kernel(%arg0: i32, %arg1: i32, %arg2: memref<1x8x128xf32, #tpu.memory_space<vmem>>, %arg3: memref<8x128xf32, #tpu.memory_space<vmem>>, %arg4: memref<128x128xf32, #tpu.memory_space<vmem>>, %arg5: memref<1x8x128xf32, #tpu.memory_space<vmem>>, %arg6: memref<8x128xf32, #tpu.memory_space<vmem>>) attributes {dimension_semantics = [#tpu.dimension_semantics<parallel>, #tpu.dimension_semantics<arbitrary>], iteration_bounds = array<i64: 1, 1>, scalar_prefetch = 0 : i64, scratch_operands = 1 : i64, tpu.core_type = #tpu.core_type<tc>, window_params = [{transform_indices = @transform_0, window_bounds = array<i64: 1, 8, 128>}, {transform_indices = @transform_1, window_bounds = array<i64: 8, 128>}, {pipeline_mode = #tpu.pipeline_mode<synchronous>, transform_indices = @transform_2, window_bounds = array<i64: 128, 128>}, {transform_indices = @transform_3, window_bounds = array<i64: 1, 8, 128>}]} {
    %c0_i32 = arith.constant 0 : i32
    %0 = arith.cmpi eq, %arg1, %c0_i32 : i32
    %1 = arith.extui %0 : i1 to i32
    %c0_i32_0 = arith.constant 0 : i32
    %2 = arith.cmpi ne, %1, %c0_i32_0 : i32
    scf.if %2 {
      %c0_15 = arith.constant 0 : index
      %c0_16 = arith.constant 0 : index
      %29 = vector.load %arg3[%c0_15, %c0_16] : memref<8x128xf32, #tpu.memory_space<vmem>>, vector<8x128xf32>
      %c0_17 = arith.constant 0 : index
      %c0_18 = arith.constant 0 : index
      %30 = vector.load %arg6[%c0_17, %c0_18] : memref<8x128xf32, #tpu.memory_space<vmem>>, vector<8x128xf32>
      tpu.vector_store %arg6[%c0_17, %c0_18], %29 {strides = array<i32>} : memref<8x128xf32, #tpu.memory_space<vmem>>, vector<8x128xf32>,
    } else {
    }
    %c0 = arith.constant 0 : index
    %c0_1 = arith.constant 0 : index
    %c0_2 = arith.constant 0 : index
    %3 = vector.load %arg2[%c0, %c0_1, %c0_2] : memref<1x8x128xf32, #tpu.memory_space<vmem>>, vector<1x8x128xf32>
    %4 = vector.shape_cast %3 : vector<1x8x128xf32> to vector<8x128xf32>
    %c0_3 = arith.constant 0 : index
    %c0_4 = arith.constant 0 : index
    %5 = vector.load %arg6[%c0_3, %c0_4] : memref<8x128xf32, #tpu.memory_space<vmem>>, vector<8x128xf32>
    %c0_5 = arith.constant 0 : index
    %c0_6 = arith.constant 0 : index
    %6 = vector.load %arg4[%c0_5, %c0_6] : memref<128x128xf32, #tpu.memory_space<vmem>>, vector<128x128xf32>
    %cst = arith.constant dense<0.000000e+00> : vector<8x128xf32>
    %7 = tpu.matmul %5, %6, %cst {dimension_numbers = #tpu.dot_dimension_numbers<[1], [0], [0], [1], [0, 0, 1, 1], [], []>} : vector<8x128xf32>, vector<128x128xf32>, vector<8x128xf32> -> vector<8x128xf32>
    %8 = arith.addf %4, %7 : vector<8x128xf32>
    %9 = tpu.iota {dimensions = array<i32: 1>} : vector<8x128xi32>
    %c32_i32 = arith.constant 32 : i32
    %10 = vector.broadcast %c32_i32 : i32 to vector<8x128xi32>
    %11 = arith.cmpi sge, %9, %10 : vector<8x128xi32>
    %cst_7 = arith.constant -1.000000e+30 : f32
    %12 = vector.broadcast %cst_7 : f32 to vector<8x128xf32>
    %13 = arith.select %11, %8, %12 : vector<8x128xi1>, vector<8x128xf32>
    %cst_8 = arith.constant dense<0xFF800000> : vector<8xf32>
    %14 = vector.multi_reduction <maximumf>, %13, %cst_8 [1] : vector<8x128xf32> to vector<8xf32>
    %15 = vector.shape_cast %14 : vector<8xf32> to vector<8x1xf32>
    %16 = vector.broadcast %15 : vector<8x1xf32> to vector<8x128xf32>
    %17 = arith.subf %13, %16 : vector<8x128xf32>
    %18 = math.exp %17 : vector<8x128xf32>
    %cst_9 = arith.constant dense<0.000000e+00> : vector<8xf32>
    %19 = vector.multi_reduction <add>, %18, %cst_9 [1] : vector<8x128xf32> to vector<8xf32>
    %20 = vector.shape_cast %19 : vector<8xf32> to vector<8x1xf32>
    %21 = tpu.reciprocal %20 {approx = true} : vector<8x1xf32> -> vector<8x1xf32>
    %22 = vector.broadcast %21 : vector<8x1xf32> to vector<8x128xf32>
    %23 = arith.mulf %18, %22 : vector<8x128xf32>
    %24 = arith.select %11, %23, %8 : vector<8x128xi1>, vector<8x128xf32>
    %c0_10 = arith.constant 0 : index
    %c0_11 = arith.constant 0 : index
    %c0_12 = arith.constant 0 : index
    %25 = vector.load %arg5[%c0_10, %c0_11, %c0_12] : memref<1x8x128xf32, #tpu.memory_space<vmem>>, vector<1x8x128xf32>
    %26 = vector.shape_cast %25 : vector<1x8x128xf32> to vector<8x128xf32>
    %27 = vector.shape_cast %24 : vector<8x128xf32> to vector<1x8x128xf32>
    tpu.vector_store %arg5[%c0_10, %c0_11, %c0_12], %27 {strides = array<i32>} : memref<1x8x128xf32, #tpu.memory_space<vmem>>, vector<1x8x128xf32>,
    %c0_13 = arith.constant 0 : index
    %c0_14 = arith.constant 0 : index
    %28 = vector.load %arg6[%c0_13, %c0_14] : memref<8x128xf32, #tpu.memory_space<vmem>>, vector<8x128xf32>
    tpu.vector_store %arg6[%c0_13, %c0_14], %24 {strides = array<i32>} : memref<8x128xf32, #tpu.memory_space<vmem>>, vector<8x128xf32>,
    return
  }
  func.func @transform_0(%arg0: i32, %arg1: i32) -> (i32, i32, i32) {
    %c0_i32 = arith.constant 0 : i32
    %c0_i32_0 = arith.constant 0 : i32
    return %arg1, %arg0, %c0_i32 : i32, i32, i32
  }
  func.func @transform_1(%arg0: i32, %arg1: i32) -> (i32, i32) {
    %c0_i32 = arith.constant 0 : i32
    %c0_i32_0 = arith.constant 0 : i32
    return %arg0, %c0_i32 : i32, i32
  }
  func.func @transform_2(%arg0: i32, %arg1: i32) -> (i32, i32) {
    %c0_i32 = arith.constant 0 : i32
    %c0_i32_0 = arith.constant 0 : i32
    %c0_i32_1 = arith.constant 0 : i32
    return %c0_i32, %c0_i32_0 : i32, i32
  }
  func.func @transform_3(%arg0: i32, %arg1: i32) -> (i32, i32, i32) {
    %c0_i32 = arith.constant 0 : i32
    %c0_i32_0 = arith.constant 0 : i32
    return %arg1, %arg0, %c0_i32 : i32, i32, i32
  }
}

</mosaic_0001>

<bundles_post_ra>
// kernel: tpu_custom_call.1
= control target key start
LH: loop header
LB: loop body
LE: loop exit
PB: predicated region body
PF: predicated region fallthrough
CT: control target
= control target key end

     0   :  { %8 = vsyncpa [#allocation4], 0  ;;  %s289_s0 = inlined_call_operand.hbm [shape: f32[1,8,128], index: 0, kind: input, shape index: {}]   ;;  %s290_s1 = inlined_call_operand.hbm [shape: f32[8,128], index: 1, kind: input, shape index: {}]   ;;  %s291_s2 = inlined_call_operand.hbm [shape: f32[128,128], index: 2, kind: input, shape index: {}]   ;;  %s292_s3 = inlined_call_operand.hbm [shape: f32[1,8,128], index: 3, kind: output, shape index: {}]  }
   0x1   :  { %9 = vsyncpa [#allocation7], 0  ;;  %s27_s14 = sshll.u32 %s290_s1, 4  ;;  %s28_s14 = int_to_ptr.hbm [resolvable:$true] %s27_s14 }
   0x2   :  { %10 = vsyncpa [#allocation5], 0  ;;  %s249_s15 = smov [#allocation6]   ;;  %s16_s19 = sshll.u32 %s289_s0, 4  ;;  %s17_s19 = int_to_ptr.hbm [resolvable:$true] %s16_s19 }
   0x3   :  { %s29_s16 = sshll.u32 %s249_s15, 4  ;;  %s250_s20 = smov [#allocation3]   ;;  %s30_s16 = int_to_ptr.vmem [resolvable:$true] %s29_s16 }
   0x4   :  { %32 = dma.hbm_to_vmem [thread:$0]  %s28_s14, 128, %s30_s16, [#allocation7]  }
   0x5   :  { %s18_s21 = sshll.u32 %s250_s20, 4  ;;  %s37_s24 = sshll.u32 %s291_s2, 4  ;;  %s19_s21 = int_to_ptr.vmem [resolvable:$true] %s18_s21  ;;  %s38_s24 = int_to_ptr.hbm [resolvable:$true] %s37_s24 }
   0x6   :  { %21 = dma.hbm_to_vmem [thread:$0]  %s17_s19, 128, %s19_s21, [#allocation4]  }
   0x7   :  { %s251_s1 = smov [#allocation8]   ;;  %s252_s26 = smov 128  }
   0x8   :  { %s39_s25 = sshll.u32 %s251_s1, 4  ;;  %s253_s27 = smov 8   ;;  %s40_s25 = int_to_ptr.vmem [resolvable:$true] %s39_s25 }
   0x9   :  { %45 = dma.hbm_to_vmem [thread:$0]  %s38_s24, 2048, %s40_s25, [#allocation7], %s252_s26, %s252_s26, %s253_s27  }
   0xa   :  { %243 = dma.done.wait [#allocation4], 128  }
   0xb   :  { %244 = vsyncadd [#allocation4], 4294967168 }
   0xc   :  { %245 = dma.done.wait [#allocation7], 2176  }
   0xd   :  { %246 = vsyncadd [#allocation7], 4294965120  ;;  %v81_v0 = vld [vmem:[#allocation8 + $0x78] sm:$0xff]  ;;  %v80_v1 = vld [vmem:[#allocation8 + $0x70] sm:$0xff]  ;;  %v103_v17 = vlaneseq  ;;  %s254_s0 = smov [#allocation9]   ;;  %s126_s30 = sshll.u32 %s292_s3, 4  ;;  %s127_s30 = int_to_ptr.hbm [resolvable:$true] %s126_s30 }
   0xe   :  { %82 = vmatpush.msra.mxu0 %v81_v0  ;;  %v79_v2 = vld [vmem:[#allocation8 + $0x68] sm:$0xff]  ;;  %v78_v3 = vld [vmem:[#allocation8 + $0x60] sm:$0xff]  ;;  %v77_v4 = vld [vmem:[#allocation8 + $0x58] sm:$0xff]  ;;  %s124_s2 = sshll.u32 %s254_s0, 4  ;;  %s125_s2 = int_to_ptr.vmem [resolvable:$true] %s124_s2 }
   0xf   :  { %v76_v5 = vld [vmem:[#allocation8 + $0x50] sm:$0xff]  ;;  %v75_v6 = vld [vmem:[#allocation8 + $0x48] sm:$0xff]  ;;  %v74_v7 = vld [vmem:[#allocation8 + $0x40] sm:$0xff]  ;;  %v104_v18 = vand.u32 127, %v103_v17 }
  0x10   :  { %83 = vmatpush.msra.mxu0 %v80_v1  ;;  %v73_v8 = vld [vmem:[#allocation8 + $0x38] sm:$0xff]  ;;  %v72_v9 = vld [vmem:[#allocation8 + $0x30] sm:$0xff]  ;;  %v71_v10 = vld [vmem:[#allocation8 + $0x28] sm:$0xff] }
  0x11   :  { %v70_v11 = vld [vmem:[#allocation8 + $0x20] sm:$0xff]  ;;  %v69_v12 = vld [vmem:[#allocation8 + $0x18] sm:$0xff]  ;;  %v68_v13 = vld [vmem:[#allocation8 + $0x10] sm:$0xff]  ;;  %vm105_vm0 = vcmp.ge.s32.totalorder %v104_v18, 32 }
  0x12   :  { %84 = vmatpush.msra.mxu0 %v79_v2  ;;  %v67_v14 = vld [vmem:[#allocation8 + $0x8] sm:$0xff]  ;;  %v66_v15 = vld [vmem:[#allocation8] sm:$0xff]  ;;  %v62_v16 = vld [vmem:[#allocation6] sm:$0xff] }
  0x13   :  { %v64_v19 = vld [vmem:[#allocation3] sm:$0xff] }
  0x14   :  { %85 = vmatpush.msra.mxu0 %v78_v3 }
  0x16   :  { %86 = vmatpush.msra.mxu0 %v77_v4 }
  0x18   :  { %87 = vmatpush.msra.mxu0 %v76_v5 }
  0x1a   :  { %88 = vmatpush.msra.mxu0 %v75_v6 }
  0x1c   :  { %89 = vmatpush.msra.mxu0 %v74_v7 }
  0x1e   :  { %90 = vmatpush.msra.mxu0 %v73_v8 }
  0x20   :  { %91 = vmatpush.msra.mxu0 %v72_v9 }
  0x22   :  { %92 = vmatpush.msra.mxu0 %v71_v10 }
  0x24   :  { %93 = vmatpush.msra.mxu0 %v70_v11 }
  0x26   :  { %94 = vmatpush.msra.mxu0 %v69_v12 }
  0x28   :  { %95 = vmatpush.msra.mxu0 %v68_v13 }
  0x2a   :  { %96 = vmatpush.msra.mxu0 %v67_v14 }
  0x2c   :  { %97 = vmatpush.msra.mxu0 %v66_v15 }
  0x2d   :  { %98 = vmatmul.f32.vlgmr.msra.gmra.mxu0 %v62_v16 }
  0xaa   :  { %v99_v20 = vpop.f32.mrf.mxu0 }
  0xab   :  { %v102_v21 = vadd.f32 %v99_v20, %v64_v19 }
  0xad   :  { %v106_v22 = vsel %vm105_vm0, %v102_v21, -1e+30 }
  0xae   :  { %107 = vmax.xlane.f32.xlu0 %v106_v22 }
 0x121   :  { %v108_v23 = vpop.xlane.xlu0 %107 }
 0x122   :  { %v109_v24 = vsub.f32 %v106_v22, %v108_v23 }
 0x124   :  { %v110_v25 = vmul.f32 1.442695, %v109_v24 }
 0x126   :  { %143 = vpow2.f32 %v110_v25 }
 0x12c   :  { %v144_v26 = vpop.eup %143 }
 0x12d   :  { %112 = vadd.xlane.f32.xlu0 %v144_v26 }
 0x1a0   :  { %v113_v27 = vpop.xlane.xlu0 %112 }
 0x1a1   :  { %145 = vrcp.f32 %v113_v27 }
 0x1a7   :  { %v146_v28 = vpop.eup %145 }
 0x1a8   :  { %v115_v29 = vmul.f32 %v146_v28, %v144_v26 }
 0x1aa   :  { %v116_v30 = vsel %vm105_vm0, %v115_v29, %v102_v21 }
 0x1ab   :  { %117 = vst [vmem:[#allocation9] sm:$0xff] %v116_v30 }
 0x1ac   :  { %129 = dma.vmem_to_hbm [thread:$0]  %s125_s2, 128, %s127_s30, [#allocation5]  }
 0x1ad   :  { %247 = dma.done.wait [#allocation5], 128  }
 0x1ae   :  { %248 = vsyncadd [#allocation5], 4294967168 }
 0x1af   :  { %134 = vsyncpa [#allocation4], 1 }
 0x1b0   :  { %135 = vsyncpa [#allocation7], 1 }
 0x1b1   :  { %136 = vsyncpa [#allocation5], 1 }

</bundles_post_ra>
